<compile_context>
chip_gen: v7x
topology: tpu7x:2x2x1
jax: 0.10.0
libtpu: 0.0.40
codegen_flags: <defaults>
</compile_context>

<pallas_src>
import jax
import jax.numpy as jnp
from jax.experimental import pallas as pl
from jax.experimental.pallas import tpu as pltpu

HIDDEN = 256


def _critic_tower_kernel(s_ref, a_ref,
                         w1s_ref, w1a_ref, b1_ref,
                         w2_ref, b2_ref,
                         w3_ref, b3_ref,
                         w4_ref, b4_ref,
                         w5_ref, b5_ref,
                         q_ref):
    """One Q tower per grid step (grid axis 0 = tower index)."""
    # Layer 1 (concat-free): state @ W1[:n_states] + action @ W1[n_states:] + b1
    h = (jnp.dot(s_ref[...], w1s_ref[...], preferred_element_type=jnp.float32)
         + jnp.dot(a_ref[...], w1a_ref[...], preferred_element_type=jnp.float32)
         + b1_ref[...])
    h = jnp.maximum(h, 0.0)

    # Layers 2-4: weights stored bf16 in HBM (halves DMA), upcast in VMEM,
    # f32 accumulation on the MXU.
    for w_ref, b_ref in ((w2_ref, b2_ref), (w3_ref, b3_ref), (w4_ref, b4_ref)):
        h = jnp.dot(h, w_ref[...].astype(jnp.float32),
                    preferred_element_type=jnp.float32) + b_ref[...]
        h = jnp.maximum(h, 0.0)

    # Head (kept f32) + tanh on the EUP.
    q = jnp.dot(h, w5_ref[...], preferred_element_type=jnp.float32) + b5_ref[...]
    q_ref[...] = jnp.tanh(q)


def critic_forward(state, action, kparams):
    """kparams: tuple (w1s, w1a, b1, w2, b2, w3, b3, w4, b4, w5, b5), each with a
    leading tower axis of size 2 (see pack_kernel_params)."""
    B, n_states = state.shape
    _, n_actions = action.shape

    # Inputs shared by both towers: full-array blocks, same block every step.
    shared_spec = lambda arr: pl.BlockSpec(arr.shape, lambda t: (0, 0))
    # Per-tower stacked params: leading tower dim selected by the grid index and
    # squeezed out of the kernel view.
    tower_spec = lambda arr: pl.BlockSpec((None,) + arr.shape[1:],
                                          lambda t: (t, 0, 0))

    flops = 2 * 2 * B * ((n_states + n_actions) * HIDDEN
                         + 3 * HIDDEN * HIDDEN + HIDDEN)
    bytes_accessed = (sum(int(a.size) * a.dtype.itemsize
                          for a in (state, action) + tuple(kparams))
                      + 2 * B * 4)
    cost = pl.CostEstimate(flops=flops, transcendentals=2 * B,
                           bytes_accessed=bytes_accessed)

    out = pl.pallas_call(
        _critic_tower_kernel,
        out_shape=jax.ShapeDtypeStruct((2, B, 1), jnp.float32),
        grid_spec=pltpu.PrefetchScalarGridSpec(
            num_scalar_prefetch=0,
            grid=(2,),
            in_specs=[shared_spec(state), shared_spec(action)]
                     + [tower_spec(p) for p in kparams],
            out_specs=pl.BlockSpec((None, B, 1), lambda t: (t, 0, 0)),
        ),
        compiler_params=pltpu.CompilerParams(
            dimension_semantics=("parallel",)),
        cost_estimate=cost,
    )(state, action, *kparams)

    return out[0], out[1]  # q1, q2, each (B, 1)


def init_critic_params(key, n_states, n_actions, init_w=0.003):
    """f32 params mirroring the PyTorch module (W as (in,out), b as (1,out)).

    Returns towers[tower][layer] = (w, b)."""
    d_in = n_states + n_actions
    dims = [(d_in, HIDDEN), (HIDDEN, HIDDEN), (HIDDEN, HIDDEN),
            (HIDDEN, HIDDEN), (HIDDEN, 1)]
    towers = []
    for _ in range(2):
        layers = []
        for li, (fi, fo) in enumerate(dims):
            key, kw, kb = jax.random.split(key, 3)
            bound = init_w if li == len(dims) - 1 else 1.0 / float(fi) ** 0.5
            w = jax.random.uniform(kw, (fi, fo), jnp.float32, -bound, bound)
            b = jax.random.uniform(kb, (1, fo), jnp.float32, -bound, bound)
            layers.append((w, b))
        towers.append(layers)
    return towers


def pack_kernel_params(towers, n_states):
    """Stack the two towers along axis 0; split W1 into state/action parts;
    cast the 256x256 hidden weights to bf16 (heads/biases stay f32)."""
    def stack(get, dtype=jnp.float32):
        return jnp.stack([get(t).astype(dtype) for t in towers], axis=0)

    w1s = stack(lambda t: t[0][0][:n_states])
    w1a = stack(lambda t: t[0][0][n_states:])
    b1 = stack(lambda t: t[0][1])
    w2 = stack(lambda t: t[1][0], jnp.bfloat16)
    b2 = stack(lambda t: t[1][1])
    w3 = stack(lambda t: t[2][0], jnp.bfloat16)
    b3 = stack(lambda t: t[2][1])
    w4 = stack(lambda t: t[3][0], jnp.bfloat16)
    b4 = stack(lambda t: t[3][1])
    w5 = stack(lambda t: t[4][0])
    b5 = stack(lambda t: t[4][1])
    return (w1s, w1a, b1, w2, b2, w3, b3, w4, b4, w5, b5)


def critic_reference(state, action, towers, bf16_hidden=False):
    """Pure-JAX reference. bf16_hidden=True rounds the 256x256 hidden weights to
    bf16 first (matching what the kernel consumes)."""
    x = jnp.concatenate([state, action], axis=1)
    outs = []
    for layers in towers:
        h = x
        for li, (w, b) in enumerate(layers[:-1]):
            if bf16_hidden and li > 0:
                w = w.astype(jnp.bfloat16).astype(jnp.float32)
            h = jnp.maximum(h @ w + b, 0.0)
        w, b = layers[-1]
        outs.append(jnp.tanh(h @ w + b))
    return outs[0], outs[1]


if __name__ == "__main__":
    n_states, n_actions, batch = 8, 4, 2

    key = jax.random.PRNGKey(0)
    kp, ks, ka = jax.random.split(key, 3)

    towers = init_critic_params(kp, n_states, n_actions)
    kparams = pack_kernel_params(towers, n_states)
    state = jax.random.normal(ks, (batch, n_states), jnp.float32)
    action = jax.random.normal(ka, (batch, n_actions), jnp.float32)

    q1, q2 = critic_forward(state, action, kparams)
    jax.block_until_ready((q1, q2))
    assert q1.shape == (batch, 1) and q2.shape == (batch, 1)

    # Check against a reference using the same bf16-rounded hidden weights.
    r1, r2 = critic_reference(state, action, towers, bf16_hidden=True)
    assert jnp.allclose(q1, r1, atol=1e-4, rtol=1e-4)
    assert jnp.allclose(q2, r2, atol=1e-4, rtol=1e-4)

    # Loose sanity check against the full-f32 (PyTorch-equivalent) math.
    f1, f2 = critic_reference(state, action, towers, bf16_hidden=False)
    assert jnp.allclose(q1, f1, atol=1e-2, rtol=1e-2)
    assert jnp.allclose(q2, f2, atol=1e-2, rtol=1e-2)

    print("KERNEL_OK")
</pallas_src>

<mosaic_0001>
module attributes {stable_mosaic.version = 11 : i64} {
  func.func @_critic_tower_kernel(%arg0: i32, %arg1: memref<2x8xf32, #tpu.memory_space<vmem>>, %arg2: memref<2x4xf32, #tpu.memory_space<vmem>>, %arg3: memref<1x8x256xf32, #tpu.memory_space<vmem>>, %arg4: memref<1x4x256xf32, #tpu.memory_space<vmem>>, %arg5: memref<1x1x256xf32, #tpu.memory_space<vmem>>, %arg6: memref<1x256x256xbf16, #tpu.memory_space<vmem>>, %arg7: memref<1x1x256xf32, #tpu.memory_space<vmem>>, %arg8: memref<1x256x256xbf16, #tpu.memory_space<vmem>>, %arg9: memref<1x1x256xf32, #tpu.memory_space<vmem>>, %arg10: memref<1x256x256xbf16, #tpu.memory_space<vmem>>, %arg11: memref<1x1x256xf32, #tpu.memory_space<vmem>>, %arg12: memref<1x256x1xf32, #tpu.memory_space<vmem>>, %arg13: memref<1x1x1xf32, #tpu.memory_space<vmem>>, %arg14: memref<1x2x1xf32, #tpu.memory_space<vmem>>) attributes {dimension_semantics = [#tpu.dimension_semantics<parallel>], iteration_bounds = array<i64: 2>, scalar_prefetch = 0 : i64, scratch_operands = 0 : i64, tpu.core_type = #tpu.core_type<tc>, window_params = [{pipeline_mode = #tpu.pipeline_mode<synchronous>, transform_indices = @transform_0, window_bounds = array<i64: 2, 8>}, {pipeline_mode = #tpu.pipeline_mode<synchronous>, transform_indices = @transform_1, window_bounds = array<i64: 2, 4>}, {transform_indices = @transform_2, window_bounds = array<i64: 1, 8, 256>}, {transform_indices = @transform_3, window_bounds = array<i64: 1, 4, 256>}, {transform_indices = @transform_4, window_bounds = array<i64: 1, 1, 256>}, {transform_indices = @transform_5, window_bounds = array<i64: 1, 256, 256>}, {transform_indices = @transform_6, window_bounds = array<i64: 1, 1, 256>}, {transform_indices = @transform_7, window_bounds = array<i64: 1, 256, 256>}, {transform_indices = @transform_8, window_bounds = array<i64: 1, 1, 256>}, {transform_indices = @transform_9, window_bounds = array<i64: 1, 256, 256>}, {transform_indices = @transform_10, window_bounds = array<i64: 1, 1, 256>}, {transform_indices = @transform_11, window_bounds = array<i64: 1, 256, 1>}, {transform_indices = @transform_12, window_bounds = array<i64: 1, 1, 1>}, {transform_indices = @transform_13, window_bounds = array<i64: 1, 2, 1>}]} {
    %c0 = arith.constant 0 : index
    %c0_0 = arith.constant 0 : index
    %0 = vector.load %arg1[%c0, %c0_0] : memref<2x8xf32, #tpu.memory_space<vmem>>, vector<2x8xf32>
    %c0_1 = arith.constant 0 : index
    %c0_2 = arith.constant 0 : index
    %c0_3 = arith.constant 0 : index
    %1 = vector.load %arg3[%c0_1, %c0_2, %c0_3] : memref<1x8x256xf32, #tpu.memory_space<vmem>>, vector<1x8x256xf32>
    %2 = vector.shape_cast %1 : vector<1x8x256xf32> to vector<8x256xf32>
    %cst = arith.constant dense<0.000000e+00> : vector<2x256xf32>
    %3 = tpu.matmul %0, %2, %cst {dimension_numbers = #tpu.dot_dimension_numbers<[1], [0], [0], [1], [0, 0, 1, 1], [], []>} : vector<2x8xf32>, vector<8x256xf32>, vector<2x256xf32> -> vector<2x256xf32>
    %c0_4 = arith.constant 0 : index
    %c0_5 = arith.constant 0 : index
    %4 = vector.load %arg2[%c0_4, %c0_5] : memref<2x4xf32, #tpu.memory_space<vmem>>, vector<2x4xf32>
    %c0_6 = arith.constant 0 : index
    %c0_7 = arith.constant 0 : index
    %c0_8 = arith.constant 0 : index
    %5 = vector.load %arg4[%c0_6, %c0_7, %c0_8] : memref<1x4x256xf32, #tpu.memory_space<vmem>>, vector<1x4x256xf32>
    %6 = vector.shape_cast %5 : vector<1x4x256xf32> to vector<4x256xf32>
    %cst_9 = arith.constant dense<0.000000e+00> : vector<2x256xf32>
    %7 = tpu.matmul %4, %6, %cst_9 {dimension_numbers = #tpu.dot_dimension_numbers<[1], [0], [0], [1], [0, 0, 1, 1], [], []>} : vector<2x4xf32>, vector<4x256xf32>, vector<2x256xf32> -> vector<2x256xf32>
    %8 = arith.addf %3, %7 : vector<2x256xf32>
    %c0_10 = arith.constant 0 : index
    %c0_11 = arith.constant 0 : index
    %c0_12 = arith.constant 0 : index
    %9 = vector.load %arg5[%c0_10, %c0_11, %c0_12] : memref<1x1x256xf32, #tpu.memory_space<vmem>>, vector<1x1x256xf32>
    %10 = vector.shape_cast %9 : vector<1x1x256xf32> to vector<1x256xf32>
    %11 = vector.broadcast %10 : vector<1x256xf32> to vector<2x256xf32>
    %12 = arith.addf %8, %11 : vector<2x256xf32>
    %cst_13 = arith.constant 0.000000e+00 : f32
    %13 = vector.broadcast %cst_13 : f32 to vector<2x256xf32>
    %14 = arith.maximumf %12, %13 : vector<2x256xf32>
    %c0_14 = arith.constant 0 : index
    %c0_15 = arith.constant 0 : index
    %c0_16 = arith.constant 0 : index
    %15 = vector.load %arg6[%c0_14, %c0_15, %c0_16] : memref<1x256x256xbf16, #tpu.memory_space<vmem>>, vector<1x256x256xbf16>
    %16 = vector.shape_cast %15 : vector<1x256x256xbf16> to vector<256x256xbf16>
    %17 = arith.extf %16 : vector<256x256xbf16> to vector<256x256xf32>
    %cst_17 = arith.constant dense<0.000000e+00> : vector<2x256xf32>
    %18 = tpu.matmul %14, %17, %cst_17 {dimension_numbers = #tpu.dot_dimension_numbers<[1], [0], [0], [1], [0, 0, 1, 1], [], []>} : vector<2x256xf32>, vector<256x256xf32>, vector<2x256xf32> -> vector<2x256xf32>
    %c0_18 = arith.constant 0 : index
    %c0_19 = arith.constant 0 : index
    %c0_20 = arith.constant 0 : index
    %19 = vector.load %arg7[%c0_18, %c0_19, %c0_20] : memref<1x1x256xf32, #tpu.memory_space<vmem>>, vector<1x1x256xf32>
    %20 = vector.shape_cast %19 : vector<1x1x256xf32> to vector<1x256xf32>
    %21 = vector.broadcast %20 : vector<1x256xf32> to vector<2x256xf32>
    %22 = arith.addf %18, %21 : vector<2x256xf32>
    %cst_21 = arith.constant 0.000000e+00 : f32
    %23 = vector.broadcast %cst_21 : f32 to vector<2x256xf32>
    %24 = arith.maximumf %22, %23 : vector<2x256xf32>
    %c0_22 = arith.constant 0 : index
    %c0_23 = arith.constant 0 : index
    %c0_24 = arith.constant 0 : index
    %25 = vector.load %arg8[%c0_22, %c0_23, %c0_24] : memref<1x256x256xbf16, #tpu.memory_space<vmem>>, vector<1x256x256xbf16>
    %26 = vector.shape_cast %25 : vector<1x256x256xbf16> to vector<256x256xbf16>
    %27 = arith.extf %26 : vector<256x256xbf16> to vector<256x256xf32>
    %cst_25 = arith.constant dense<0.000000e+00> : vector<2x256xf32>
    %28 = tpu.matmul %24, %27, %cst_25 {dimension_numbers = #tpu.dot_dimension_numbers<[1], [0], [0], [1], [0, 0, 1, 1], [], []>} : vector<2x256xf32>, vector<256x256xf32>, vector<2x256xf32> -> vector<2x256xf32>
    %c0_26 = arith.constant 0 : index
    %c0_27 = arith.constant 0 : index
    %c0_28 = arith.constant 0 : index
    %29 = vector.load %arg9[%c0_26, %c0_27, %c0_28] : memref<1x1x256xf32, #tpu.memory_space<vmem>>, vector<1x1x256xf32>
    %30 = vector.shape_cast %29 : vector<1x1x256xf32> to vector<1x256xf32>
    %31 = vector.broadcast %30 : vector<1x256xf32> to vector<2x256xf32>
    %32 = arith.addf %28, %31 : vector<2x256xf32>
    %cst_29 = arith.constant 0.000000e+00 : f32
    %33 = vector.broadcast %cst_29 : f32 to vector<2x256xf32>
    %34 = arith.maximumf %32, %33 : vector<2x256xf32>
    %c0_30 = arith.constant 0 : index
    %c0_31 = arith.constant 0 : index
    %c0_32 = arith.constant 0 : index
    %35 = vector.load %arg10[%c0_30, %c0_31, %c0_32] : memref<1x256x256xbf16, #tpu.memory_space<vmem>>, vector<1x256x256xbf16>
    %36 = vector.shape_cast %35 : vector<1x256x256xbf16> to vector<256x256xbf16>
    %37 = arith.extf %36 : vector<256x256xbf16> to vector<256x256xf32>
    %cst_33 = arith.constant dense<0.000000e+00> : vector<2x256xf32>
    %38 = tpu.matmul %34, %37, %cst_33 {dimension_numbers = #tpu.dot_dimension_numbers<[1], [0], [0], [1], [0, 0, 1, 1], [], []>} : vector<2x256xf32>, vector<256x256xf32>, vector<2x256xf32> -> vector<2x256xf32>
    %c0_34 = arith.constant 0 : index
    %c0_35 = arith.constant 0 : index
    %c0_36 = arith.constant 0 : index
    %39 = vector.load %arg11[%c0_34, %c0_35, %c0_36] : memref<1x1x256xf32, #tpu.memory_space<vmem>>, vector<1x1x256xf32>
    %40 = vector.shape_cast %39 : vector<1x1x256xf32> to vector<1x256xf32>
    %41 = vector.broadcast %40 : vector<1x256xf32> to vector<2x256xf32>
    %42 = arith.addf %38, %41 : vector<2x256xf32>
    %cst_37 = arith.constant 0.000000e+00 : f32
    %43 = vector.broadcast %cst_37 : f32 to vector<2x256xf32>
    %44 = arith.maximumf %42, %43 : vector<2x256xf32>
    %c0_38 = arith.constant 0 : index
    %c0_39 = arith.constant 0 : index
    %c0_40 = arith.constant 0 : index
    %45 = vector.load %arg12[%c0_38, %c0_39, %c0_40] : memref<1x256x1xf32, #tpu.memory_space<vmem>>, vector<1x256x1xf32>
    %46 = vector.shape_cast %45 : vector<1x256x1xf32> to vector<256x1xf32>
    %cst_41 = arith.constant dense<0.000000e+00> : vector<2x1xf32>
    %47 = tpu.matmul %44, %46, %cst_41 {dimension_numbers = #tpu.dot_dimension_numbers<[1], [0], [0], [1], [0, 0, 1, 1], [], []>} : vector<2x256xf32>, vector<256x1xf32>, vector<2x1xf32> -> vector<2x1xf32>
    %c0_42 = arith.constant 0 : index
    %c0_43 = arith.constant 0 : index
    %c0_44 = arith.constant 0 : index
    %48 = vector.load %arg13[%c0_42, %c0_43, %c0_44] : memref<1x1x1xf32, #tpu.memory_space<vmem>>, vector<1x1x1xf32>
    %49 = vector.shape_cast %48 : vector<1x1x1xf32> to vector<1x1xf32>
    %50 = vector.broadcast %49 : vector<1x1xf32> to vector<2x1xf32>
    %51 = arith.addf %47, %50 : vector<2x1xf32>
    %52 = math.tanh %51 : vector<2x1xf32>
    %c0_45 = arith.constant 0 : index
    %c0_46 = arith.constant 0 : index
    %c0_47 = arith.constant 0 : index
    %53 = vector.load %arg14[%c0_45, %c0_46, %c0_47] : memref<1x2x1xf32, #tpu.memory_space<vmem>>, vector<1x2x1xf32>
    %54 = vector.shape_cast %53 : vector<1x2x1xf32> to vector<2x1xf32>
    %55 = vector.shape_cast %52 : vector<2x1xf32> to vector<1x2x1xf32>
    tpu.vector_store %arg14[%c0_45, %c0_46, %c0_47], %55 {strides = array<i32>} : memref<1x2x1xf32, #tpu.memory_space<vmem>>, vector<1x2x1xf32>,
    return
  }
  func.func @transform_0(%arg0: i32) -> (i32, i32) {
    %c0_i32 = arith.constant 0 : i32
    %c0_i32_0 = arith.constant 0 : i32
    %c0_i32_1 = arith.constant 0 : i32
    return %c0_i32, %c0_i32_0 : i32, i32
  }
  func.func @transform_1(%arg0: i32) -> (i32, i32) {
    %c0_i32 = arith.constant 0 : i32
    %c0_i32_0 = arith.constant 0 : i32
    %c0_i32_1 = arith.constant 0 : i32
    return %c0_i32, %c0_i32_0 : i32, i32
  }
  func.func @transform_2(%arg0: i32) -> (i32, i32, i32) {
    %c0_i32 = arith.constant 0 : i32
    %c0_i32_0 = arith.constant 0 : i32
    %c0_i32_1 = arith.constant 0 : i32
    return %arg0, %c0_i32, %c0_i32_0 : i32, i32, i32
  }
  func.func @transform_3(%arg0: i32) -> (i32, i32, i32) {
    %c0_i32 = arith.constant 0 : i32
    %c0_i32_0 = arith.constant 0 : i32
    %c0_i32_1 = arith.constant 0 : i32
    return %arg0, %c0_i32, %c0_i32_0 : i32, i32, i32
  }
  func.func @transform_4(%arg0: i32) -> (i32, i32, i32) {
    %c0_i32 = arith.constant 0 : i32
    %c0_i32_0 = arith.constant 0 : i32
    %c0_i32_1 = arith.constant 0 : i32
    return %arg0, %c0_i32, %c0_i32_0 : i32, i32, i32
  }
  func.func @transform_5(%arg0: i32) -> (i32, i32, i32) {
    %c0_i32 = arith.constant 0 : i32
    %c0_i32_0 = arith.constant 0 : i32
    %c0_i32_1 = arith.constant 0 : i32
    return %arg0, %c0_i32, %c0_i32_0 : i32, i32, i32
  }
  func.func @transform_6(%arg0: i32) -> (i32, i32, i32) {
    %c0_i32 = arith.constant 0 : i32
    %c0_i32_0 = arith.constant 0 : i32
    %c0_i32_1 = arith.constant 0 : i32
    return %arg0, %c0_i32, %c0_i32_0 : i32, i32, i32
  }
  func.func @transform_7(%arg0: i32) -> (i32, i32, i32) {
    %c0_i32 = arith.constant 0 : i32
    %c0_i32_0 = arith.constant 0 : i32
    %c0_i32_1 = arith.constant 0 : i32
    return %arg0, %c0_i32, %c0_i32_0 : i32, i32, i32
  }
  func.func @transform_8(%arg0: i32) -> (i32, i32, i32) {
    %c0_i32 = arith.constant 0 : i32
    %c0_i32_0 = arith.constant 0 : i32
    %c0_i32_1 = arith.constant 0 : i32
    return %arg0, %c0_i32, %c0_i32_0 : i32, i32, i32
  }
  func.func @transform_9(%arg0: i32) -> (i32, i32, i32) {
    %c0_i32 = arith.constant 0 : i32
    %c0_i32_0 = arith.constant 0 : i32
    %c0_i32_1 = arith.constant 0 : i32
    return %arg0, %c0_i32, %c0_i32_0 : i32, i32, i32
  }
  func.func @transform_10(%arg0: i32) -> (i32, i32, i32) {
    %c0_i32 = arith.constant 0 : i32
    %c0_i32_0 = arith.constant 0 : i32
    %c0_i32_1 = arith.constant 0 : i32
    return %arg0, %c0_i32, %c0_i32_0 : i32, i32, i32
  }
  func.func @transform_11(%arg0: i32) -> (i32, i32, i32) {
    %c0_i32 = arith.constant 0 : i32
    %c0_i32_0 = arith.constant 0 : i32
    %c0_i32_1 = arith.constant 0 : i32
    return %arg0, %c0_i32, %c0_i32_0 : i32, i32, i32
  }
  func.func @transform_12(%arg0: i32) -> (i32, i32, i32) {
    %c0_i32 = arith.constant 0 : i32
    %c0_i32_0 = arith.constant 0 : i32
    %c0_i32_1 = arith.constant 0 : i32
    return %arg0, %c0_i32, %c0_i32_0 : i32, i32, i32
  }
  func.func @transform_13(%arg0: i32) -> (i32, i32, i32) {
    %c0_i32 = arith.constant 0 : i32
    %c0_i32_0 = arith.constant 0 : i32
    %c0_i32_1 = arith.constant 0 : i32
    return %arg0, %c0_i32, %c0_i32_0 : i32, i32, i32
  }
}

</mosaic_0001>

<bundles_post_ra>
// kernel: tpu_custom_call.1
= control target key start
LH: loop header
LB: loop body
LE: loop exit
PB: predicated region body
PF: predicated region fallthrough
CT: control target
= control target key end

     0   :  { %s3014_s0 = inlined_call_operand.vmem [shape: f32[2,8], index: 0, kind: input, shape index: {}]   ;;  %s3015_s1 = inlined_call_operand.hbm [shape: f32[2,4], index: 1, kind: input, shape index: {}]   ;;  %s3016_s2 = inlined_call_operand.hbm [shape: f32[2,8,256], index: 2, kind: input, shape index: {}]   ;;  %s3017_s3 = inlined_call_operand.vmem [shape: f32[2,4,256], index: 3, kind: input, shape index: {}]   ;;  %s3018_s4 = inlined_call_operand.vmem [shape: f32[2,1,256], index: 4, kind: input, shape index: {}]   ;;  %s3019_s5 = inlined_call_operand.vmem [shape: bf16[2,256,256], index: 5, kind: input, shape index: {}]   ;;  %s3020_s6 = inlined_call_operand.vmem [shape: f32[2,1,256], index: 6, kind: input, shape index: {}]   ;;  %s3021_s7 = inlined_call_operand.hbm [shape: bf16[2,256,256], index: 7, kind: input, shape index: {}]   ;;  %s3022_s8 = inlined_call_operand.vmem [shape: f32[2,1,256], index: 8, kind: input, shape index: {}]   ;;  %s3023_s9 = inlined_call_operand.hbm [shape: bf16[2,256,256], index: 9, kind: input, shape index: {}]   ;;  %s3024_s10 = inlined_call_operand.vmem [shape: f32[2,1,256], index: 10, kind: input, shape index: {}]   ;;  %s3025_s11 = inlined_call_operand.vmem [shape: f32[2,256,1], index: 11, kind: input, shape index: {}]   ;;  %s3026_s12 = inlined_call_operand.vmem [shape: f32[2,1,1], index: 12, kind: input, shape index: {}]   ;;  %s3027_s13 = inlined_call_operand.vmem [shape: f32[2,2,1], index: 13, kind: output, shape index: {}]  }
   0x1   :  { %3040 = sst [smem:[#allocation15_spill]] %s3016_s2 }
   0x2   :  { %3041 = sst [smem:[#allocation16_spill]] %s3021_s7 }
   0x3   :  { %3042 = sst [smem:[#allocation17_spill]] %s3024_s10 }
   0x4   :  { %3043 = sst [smem:[#allocation18_spill]] %s3026_s12 }
   0x5   :  { %3044 = sst [smem:[#allocation19_spill]] %s3027_s13 }
   0x6   :  { %18 = vsyncpa [#allocation3], 0 }
   0x7   :  { %19 = vsyncpa [#allocation5], 0 }
   0x8   :  { %21 = vsyncpa [#allocation5 + $0x1], 0 }
   0x9   :  { %22 = vsyncpa [#allocation8], 0 }
   0xa   :  { %24 = vsyncpa [#allocation8 + $0x1], 0  ;;  %s2583_s25 = smov 0   ;;  %s2585_s26 = smov 0  }
   0xb   :  { %s2587_s27 = smov 0   ;;  %s2589_s28 = smov 0  }
   0xc LB: > { %3045 = sst [smem:[#allocation12_spill]] %s2500_s27  ;;  %s2604_s29 = sadd.s32 1, %s2504_s28   ;;  %s2504_s28 = sphi %s2589_s28, %s3067_s28   ;;  %s2500_s27 = sphi %s2587_s27, %s3069_s27   ;;  %s2496_s26 = sphi %s2585_s26, %s3071_s26   ;;  %s2492_s25 = sphi %s2583_s25, %s3070_s25  }
   0xd   : > { %3046 = sst [smem:[#allocation13_spill]] %s2604_s29  ;;  %s79_s30 = sadd.s32 1, %s2500_s27 }
   0xe   : > { %s76_s14 = ssub.s32 %s2504_s28, %s2604_s29  ;;  %p86_p0 = scmp.ne.s32.totalorder %s2500_s27, %s2496_s26 }
   0xf   : > { %p77_p1 = scmp.eq.s32.totalorder %s76_s14, 0  ;;  %p87_p2 = scmp.eq.s32.totalorder %s2504_s28, 0 }
  0x10   : > { %p2159_p3 = scmp.lt.s32.totalorder %s2504_s28, 2  ;;  %s416_s16 = sand.u32 1, %s2504_s28  }
  0x11   : > { %s2614_s15 = scalar_select %p77_p1, %s2500_s27, %s79_s30  }
  0x12   : > { %p88_p4 = por %p87_p2, %p86_p0  ;;  %s2618_s17 = sand.u32 1, %s2500_s27  }
  0x13   : > { %3047 = sst [smem:[#allocation14_spill]] %s2614_s15  ;;  %s1739_s18 = sshll.u32 %s2618_s17, 4 }
  0x14   : > { %s1771_s19 = sshll.u32 %s2504_s28, 8  ;;  %s3048_s2 = sld [smem:[#allocation15_spill]] }
  0x15   : > { %s420_s23 = scalar_lea.vmem [#allocation4], %s1739_s18  ;;  %p2627_p5 = pnand %p2159_p3, %p88_p4 }
  0x16   : > { %s428_s24 = sshll.u32 %s420_s23, 4  ;;  %s3031_s14 = sshll.u32 %s2618_s17, 8  ;;  %s2631_s24 = int_to_ptr.vmem [resolvable:$true] %s428_s24 }
  0x17   : > { %s3049_s30 = scalar_select %p2627_p5, 1, 0 }
  0x18   : > { %s2634_s15 = scalar_lea.sflag [#allocation5], %s416_s16  ;;  %p2640_p7 = pneg %p2627_p5 }
  0x1a   : > { %s2625_s22 = scalar_lea.hbm %s3048_s2, %s1771_s19  ;;  %s2349_s21 = scalar_lea.hbm %s3048_s2, 512 }
  0x1b   : > { %s2344_s27 = scalar_lea.hbm %s2625_s22, 256  ;;  %p2350_p10 = scmp.lt.u32.totalorder %s2625_s22, %s3048_s2 }
  0x1c   : > { %p2345_p6 = scmp.ne.s32.totalorder %s2625_s22, %s2344_s27  ;;  %p2351_p11 = scmp.lt.u32.totalorder %s2349_s21, %s2344_s27 }
  0x1d   : > { %s3050_s19 = scalar_select %p2640_p7, 1, 0 }
  0x1e   : > { %p2347_p8 = pnand %p2640_p7, %p2345_p6  ;;  %p2352_p12 = por %p2351_p11, %p2350_p10 }
  0x1f   : > { %p2353_p13 = scmp.lt.u32.totalorder %s2344_s27, %s2625_s22 }
  0x20   : > { %p2348_p9 = pneg %p2347_p8 }
  0x21   : > { %p2354_p0 = por %p2353_p13, %p2352_p12 }
  0x23   : > { %p2355_p1 = pnand %p2354_p0, %p2348_p9 }
  0x25   : > { %2358 = shalt.err (!%p2355_p1)
}
  0x26   : > { %s2359_s16 = scalar_lea.vmem %s2631_s24, 256  ;;  %s2506_s18 = smov [#allocation4]  }
  0x27   : > { %p2360_p2 = scmp.ne.s32.totalorder %s2631_s24, %s2359_s16  ;;  %s2364_s20 = sshll.u32 %s2506_s18, 4  ;;  %s2365_s20 = int_to_ptr.vmem [resolvable:$false] %s2364_s20 }
  0x28   : > { %s2366_s29 = scalar_lea.vmem %s2365_s20, 512  ;;  %p2367_p6 = scmp.lt.s32.totalorder %s2631_s24, %s2365_s20 }
  0x29   : > { %p2362_p3 = pnand %p2360_p2, %p2640_p7  ;;  %p2368_p8 = scmp.lt.s32.totalorder %s2366_s29, %s2359_s16 }
  0x2b   : > { %p2363_p4 = pneg %p2362_p3  ;;  %p2369_p10 = por %p2368_p8, %p2367_p6 }
  0x2d   : > { %p2370_p11 = pnand %p2369_p10, %p2363_p4 }
  0x2f   : > { %2373 = shalt.err (!%p2370_p11)
}
  0x30   : > { %2151 = dma.hbm_to_vmem [thread:$0]  (!%p2627_p5), %s2625_s22, 256, %s2631_s24, %s2634_s15  }
  0x31   : > { %s469_s27 = scalar_lea.vmem [#allocation6], %s3031_s14  ;;  %s2669_s23 = sadd.s32 4294967295, %s2504_s28  }
  0x32   : > { %s476_s21 = sshll.u32 %s469_s27, 4  ;;  %p92_p9 = scmp.ne.s32.totalorder %s2496_s26, %s2492_s25  ;;  %s2666_s21 = int_to_ptr.vmem [resolvable:$true] %s476_s21 }
  0x33   : > { %p3033_p12 = scmp.eq.s32.totalorder %s2669_s23, 0  ;;  %p1736_p13 = scmp.ge.s32.totalorder %s2504_s28, 1 }
  0x34   : > { %p389_p0 = scmp.lt.s32.totalorder %s2504_s28, 3  ;;  %s2507_s24 = smov [#allocation2]  }
  0x35   : > { %p2678_p1 = por %p3033_p12, %p92_p9  ;;  %s405_s18 = sshll.u32 %s2507_s24, 4  ;;  %s2686_s18 = int_to_ptr.vmem [resolvable:$true] %s405_s18 }
  0x36   : > { %p2682_p2 = pnand %p1736_p13, %p389_p0  ;;  %s3032_s20 = sshll.u32 %s2504_s28, 12 }
  0x37   : > { %s3051_s16 = scalar_select %p2678_p1, 1, 0 }
  0x38   : > { %s3052_s22 = scalar_select %p2682_p2, 1, 0 }
  0x39   : > { %p2144_p3 = pneg %p2682_p2  ;;  %s3053_s7 = sld [smem:[#allocation16_spill]] }
  0x3b   : > { %p2700_p4 = pnand %p2144_p3, %p3033_p12 }
  0x3d   : > { %s3054_s14 = scalar_select %p2700_p4, 1, 0 }
  0x3f   : > { %s2696_s27 = scalar_lea.hbm %s3053_s7, %s3032_s20  ;;  %s2379_s25 = scalar_lea.hbm %s3053_s7, 8192 }
  0x40   : > { %s2374_s24 = scalar_lea.hbm %s2696_s27, 4096  ;;  %p2380_p11 = scmp.lt.u32.totalorder %s2696_s27, %s3053_s7 }
  0x41   : > { %p2375_p6 = scmp.ne.s32.totalorder %s2696_s27, %s2374_s24  ;;  %p2381_p9 = scmp.lt.u32.totalorder %s2379_s25, %s2374_s24 }
  0x42   : > { %p2383_p0 = scmp.lt.u32.totalorder %s2374_s24, %s2696_s27 }
  0x43   : > { %p2377_p8 = pnand %p2375_p6, %p2640_p7  ;;  %p2382_p13 = por %p2381_p9, %p2380_p11 }
  0x45   : > { %p2378_p10 = pneg %p2377_p8  ;;  %p2384_p3 = por %p2383_p0, %p2382_p13 }
  0x47   : > { %p2385_p12 = pnand %p2384_p3, %p2378_p10 }
  0x49   : > { %2388 = shalt.err (!%p2385_p12)
}
  0x4a   : > { %s2389_s12 = scalar_lea.vmem %s2666_s21, 4096  ;;  %s2508_s2 = smov [#allocation6]  }
  0x4b   : > { %p2390_p6 = scmp.ne.s32.totalorder %s2666_s21, %s2389_s12  ;;  %s2394_s13 = sshll.u32 %s2508_s2, 4  ;;  %s2395_s13 = int_to_ptr.vmem [resolvable:$false] %s2394_s13 }
  0x4c   : > { %s2396_s20 = scalar_lea.vmem %s2395_s13, 8192  ;;  %p2397_p2 = scmp.lt.s32.totalorder %s2666_s21, %s2395_s13 }
  0x4d   : > { %p2392_p8 = pnand %p2390_p6, %p2640_p7  ;;  %p2398_p4 = scmp.lt.s32.totalorder %s2396_s20, %s2389_s12 }
  0x4f   : > { %p2393_p1 = pneg %p2392_p8  ;;  %p2399_p11 = por %p2398_p4, %p2397_p2 }
  0x51   : > { %p2400_p9 = pnand %p2399_p11, %p2393_p1 }
  0x53   : > { %2403 = shalt.err (!%p2400_p9)
}
  0x54   : > { %s2509_s24 = smov 128   ;;  %s2510_s25 = smov 8  }
  0x55   : > { %2154 = dma.hbm_to_vmem [thread:$0]  (!%p2627_p5), %s2696_s27, 4096, %s2666_s21, %s2634_s15, %s2509_s24, %s2509_s24, %s2510_s25  }
  0x56   : > { %s2404_s13 = scalar_lea.hbm %s3015_s1, 32  ;;  %p3055_p1 = scmp.ne.s32.totalorder %s3054_s14, 0 }
  0x57   : > { %p2405_p12 = scmp.ne.s32.totalorder %s3015_s1, %s2404_s13  ;;  %p2411_p13 = scmp.lt.u32.totalorder %s2404_s13, %s3015_s1 }
  0x58   : > { %p2406_p2 = pneg %p3055_p1 }
  0x5a   : > { %p2407_p4 = pnand %p2406_p2, %p2405_p12 }
  0x5c   : > { %p2408_p10 = pneg %p2407_p4 }
  0x5e   : > { %p2413_p0 = pnand %p2411_p13, %p2408_p10 }
  0x60   : > { %2416 = shalt.err (!%p2413_p0)
}
  0x61   : > { %s2417_s15 = scalar_lea.vmem %s2686_s18, 32  ;;  %p2425_p11 = scmp.lt.s32.totalorder %s2686_s18, %s2686_s18 }
  0x62   : > { %p2418_p3 = scmp.ne.s32.totalorder %s2686_s18, %s2417_s15  ;;  %p2426_p9 = scmp.lt.s32.totalorder %s2417_s15, %s2417_s15 }
  0x64   : > { %p2420_p6 = pnand %p2418_p3, %p2406_p2  ;;  %p2427_p5 = por %p2426_p9, %p2425_p11 }
  0x66   : > { %p2421_p8 = pneg %p2420_p6 }
  0x68   : > { %p2428_p7 = pnand %p2427_p5, %p2421_p8 }
  0x6a   : > { %2431 = shalt.err (!%p2428_p7)
}
  0x6b   : > { %2147 = dma.hbm_to_vmem [thread:$0]  (!%p3055_p1), %s3015_s1, 32, %s2686_s18, [#allocation3]  }
  0x6c   : > { %s3056_s21 = sshll.u32 %s2504_s28, 12  ;;  %s3057_s13 = sshll.u32 %s2618_s17, 8 }
  0x6d   : > { %s2755_s2 = scalar_lea.hbm %s3023_s9, %s3056_s21  ;;  %s497_s14 = scalar_lea.vmem [#allocation7], %s3057_s13 }
  0x6e   : > { %s504_s12 = sshll.u32 %s497_s14, 4  ;;  %s494_s20 = scalar_lea.sflag [#allocation8], %s2618_s17  ;;  %s2759_s12 = int_to_ptr.vmem [resolvable:$true] %s504_s12 }
  0x6f   : > { %s2432_s15 = scalar_lea.hbm %s2755_s2, 4096  ;;  %p3058_p7 = scmp.ne.s32.totalorder %s3050_s19, 0 }
  0x70   : > { %p2433_p5 = scmp.ne.s32.totalorder %s2755_s2, %s2432_s15  ;;  %s2437_s7 = scalar_lea.hbm %s3023_s9, 8192 }
  0x71   : > { %p2438_p2 = scmp.lt.u32.totalorder %s2755_s2, %s3023_s9  ;;  %p2439_p4 = scmp.lt.u32.totalorder %s2437_s7, %s2432_s15 }
  0x72   : > { %p2435_p12 = pnand %p2433_p5, %p3058_p7  ;;  %p2441_p13 = scmp.lt.u32.totalorder %s2432_s15, %s2755_s2 }
  0x73   : > { %p2440_p10 = por %p2439_p4, %p2438_p2 }
  0x74   : > { %p2436_p1 = pneg %p2435_p12 }
  0x75   : > { %p2442_p0 = por %p2441_p13, %p2440_p10 }
  0x77   : > { %p2443_p3 = pnand %p2442_p0, %p2436_p1 }
  0x79   : > { %2446 = shalt.err (!%p2443_p3)
}
  0x7a   : > { %s2447_s27 = scalar_lea.vmem %s2759_s12, 4096  ;;  %s2511_s29 = smov [#allocation7]  }
  0x7b   : > { %p2448_p6 = scmp.ne.s32.totalorder %s2759_s12, %s2447_s27  ;;  %s2452_s13 = sshll.u32 %s2511_s29, 4  ;;  %s2453_s13 = int_to_ptr.vmem [resolvable:$false] %s2452_s13 }
  0x7c   : > { %s2454_s14 = scalar_lea.vmem %s2453_s13, 8192  ;;  %p2455_p9 = scmp.lt.s32.totalorder %s2759_s12, %s2453_s13 }
  0x7d   : > { %p2450_p8 = pnand %p2448_p6, %p3058_p7  ;;  %p2456_p5 = scmp.lt.s32.totalorder %s2454_s14, %s2447_s27 }
  0x7f   : > { %p2451_p11 = pneg %p2450_p8  ;;  %p2457_p12 = por %p2456_p5, %p2455_p9 }
  0x81   : > { %p2458_p2 = pnand %p2457_p12, %p2451_p11 }
  0x83   : > { %2461 = shalt.err (!%p2458_p2)
}
  0x84   : > { %p3059_p1 = scmp.ne.s32.totalorder %s3049_s30, 0  ;;  %p3060_p7 = scmp.ne.s32.totalorder %s3052_s22, 0 }
  0x85   : > { %p3061_p4 = scmp.eq.s32.totalorder (!%p3060_p7), %s2669_s23, 0 }
  0x86   : > { %2157 = dma.hbm_to_vmem [thread:$0]  (!%p3059_p1), %s2755_s2, 4096, %s2759_s12, %s494_s20, %s2509_s24, %s2509_s24, %s2510_s25  }
  0x87   : > { %537 = sbr.rel (%p3060_p7) target bundleno = 1270 (0x4f6), region = 72 }
  0x8e   : > { %2479 = dma.done.wait (%p3061_p4), [#allocation3], 32   ;;  %p3062_p10 = pmov %p3061_p4 }
  0x8f   : > { %s543_s30 = sand.u32 1, %s2669_s23   ;;  %s545_s19 = sand.u32 1, %s2496_s26  }
  0x90   : > { %2481 = vsyncadd (%p3062_p10), [#allocation3], 4294967264  ;;  %s1750_s15 = sshll.u32 %s545_s19, 4  ;;  %s544_s28 = scalar_lea.sflag [#allocation5], %s543_s30 }
  0x91   : > { %s547_s17 = scalar_lea.vmem [#allocation4], %s1750_s15  ;;  %p3063_p13 = scmp.ne.s32.totalorder %s3051_s16, 0 }
  0x93   : > { %2483 = dma.done.wait (%p3063_p13), %s544_s28, 4352  }
  0x94   : > { %2485 = vsyncadd (%p3063_p13), %s544_s28, 4294962944  ;;  %s1751_s22 = sshll.u32 %s545_s19, 8  ;;  %s562_s25 = scalar_lea.sflag [#allocation8], %s545_s19 }
  0x95   : > { %s2800_s24 = scalar_lea.vmem [#allocation6], %s1751_s22  ;;  %s2802_s2 = scalar_lea.vmem [#allocation7], %s1751_s22 }
  0x96   : > { %2487 = dma.done.wait (%p3063_p13), %s562_s25, 4096  }
  0x97   : > { %2489 = vsyncadd (%p3063_p13), %s562_s25, 4294963200  ;;  %p651_p0 = scmp.lt.s32.totalorder %s2669_s23, 1  ;;  %v2512_v0 = vmov 0.0   ;;  %vm700_vm0 = vcmask 1043456   ;;  %v692_v3 = vld [vmem:[#allocation2] sm:$0x3] }
  0x98   : > { %769 = vmatprep.mubr.f32.mxu0 %v2512_v0  ;;  %v691_v4 = vld [vmem:[%s547_s17 + $0x8] sm:$0xff]  ;;  %vm696_vm1 = vcmask 31744   ;;  %v690_v5 = vld [vmem:[%s547_s17] sm:$0xff]  ;;  %vm776_vm2 = vcmask 64512   ;;  %s3064_s21 = sld [smem:[#allocation17_spill]]  ;;  %s3065_s13 = sld [smem:[#allocation18_spill]] }
  0x99   : > { %s3073_s23 = smov (!%p651_p0, %s2669_s23), 1  ;;  %v689_v11 = vld [vmem:[%s3014_s0] sm:$0x3]  ;;  %v2246_v39 = vld [vmem:[%s2800_s24 + $0x4] ss:$8 sps:$4 sm:$0xff]   ;;  %s3066_s28 = sld [smem:[#allocation19_spill]] }
  0x9a   : > { %s1774_s12 = sshll.u32 %s3073_s23, 3  ;;  %s1775_s20 = sshll.u32 %s3073_s23, 8  ;;  %v2248_v40 = vld [vmem:[%s2800_s24] ss:$8 sps:$4 sm:$0xff]   ;;  %v2249_v41 = vld [vmem:[%s2800_s24 + $0x14] ss:$8 sps:$4 sm:$0xff]  }
  0x9b   : > { %s655_s10 = scalar_lea.vmem %s3017_s3, %s1774_s12  ;;  %s2822_s27 = scalar_lea.vmem %s3019_s5, %s1775_s20  ;;  %v2251_v42 = vld [vmem:[%s2800_s24 + $0x10] ss:$8 sps:$4 sm:$0xff]   ;;  %v2252_v43 = vld [vmem:[%s2800_s24 + $0x24] ss:$8 sps:$4 sm:$0xff]   ;;  %v2254_v44 = vld [vmem:[%s2800_s24 + $0x20] ss:$8 sps:$4 sm:$0xff]  }
  0x9c   : > { %v693_v1 = vld [vmem:[%s655_s10] sm:$0xff]  ;;  %v2201_v8 = vld [vmem:[%s2822_s27 + $0x14] ss:$8 sps:$4 sm:$0xff]   ;;  %v2203_v9 = vld [vmem:[%s2822_s27 + $0x10] ss:$8 sps:$4 sm:$0xff]   ;;  %s2890_s14 = sshll.u32 %s3073_s23, 1  ;;  %s2947_s12 = scalar_lea.vmem %s3025_s11, %s1775_s20 }
  0x9d   : > { %v695_v2 = vcombine.high %v693_v1, %v693_v1  ;;  %v2198_v6 = vld [vmem:[%s2822_s27 + $0x4] ss:$8 sps:$4 sm:$0xff]   ;;  %v2200_v7 = vld [vmem:[%s2822_s27] ss:$8 sps:$4 sm:$0xff]   ;;  %v2207_v13 = vld [vmem:[%s2822_s27 + $0x34] ss:$8 sps:$4 sm:$0xff]   ;;  %s659_s15 = scalar_lea.vmem %s3018_s4, %s2890_s14  ;;  %s668_s22 = scalar_lea.vmem %s3020_s6, %s2890_s14 }
  0x9e   : > { %1813 = vmatprep.subr.bf16.mxu1 %v2198_v6  ;;  %v2204_v10 = vld [vmem:[%s2822_s27 + $0x24] ss:$8 sps:$4 sm:$0xff]   ;;  %v2206_v12 = vld [vmem:[%s2822_s27 + $0x20] ss:$8 sps:$4 sm:$0xff]   ;;  %v2209_v14 = vld [vmem:[%s2822_s27 + $0x30] ss:$8 sps:$4 sm:$0xff]   ;;  %s672_s18 = scalar_lea.vmem %s3022_s8, %s2890_s14  ;;  %s676_s16 = scalar_lea.vmem %s3064_s21, %s2890_s14 }
  0x9f   : > { %1764 = vmatprep.subr.msk.mxu0 %vm700_vm0, %v695_v2  ;;  %1815 = vmatpush1.bf16.msra.mxu1 %v2200_v7  ;;  %v2210_v15 = vld [vmem:[%s2822_s27 + $0x44] ss:$8 sps:$4 sm:$0xff]   ;;  %v2212_v16 = vld [vmem:[%s2822_s27 + $0x40] ss:$8 sps:$4 sm:$0xff]   ;;  %v2213_v17 = vld [vmem:[%s2822_s27 + $0x54] ss:$8 sps:$4 sm:$0xff]   ;;  %s684_s30 = scalar_lea.vmem %s3065_s13, %s3073_s23  ;;  %s688_s17 = scalar_lea.vmem %s3066_s28, %s2890_s14 }
  0xa0   : > { %1765 = vmatpush1.msk.msra.mxu0 %vm700_vm0, %v693_v1  ;;  %1817 = vmatprep.subr.bf16.mxu1 %v2201_v8  ;;  %v2215_v18 = vld [vmem:[%s2822_s27 + $0x50] ss:$8 sps:$4 sm:$0xff]   ;;  %v2216_v19 = vld [vmem:[%s2822_s27 + $0x64] ss:$8 sps:$4 sm:$0xff]   ;;  %v2218_v20 = vld [vmem:[%s2822_s27 + $0x60] ss:$8 sps:$4 sm:$0xff]  }
  0xa1   : > { %1766 = vmatmul.mubr.msk.f32.vlgmr.msra.gmra.mrb[0].mxu0 %vm696_vm1, %v692_v3  ;;  %780 = vmatprep.subr.mxu0 %v691_v4  ;;  %v2219_v21 = vld [vmem:[%s2822_s27 + $0x74] ss:$8 sps:$4 sm:$0xff]   ;;  %v2221_v22 = vld [vmem:[%s2822_s27 + $0x70] ss:$8 sps:$4 sm:$0xff]   ;;  %v2222_v23 = vld [vmem:[%s2822_s27 + $0x84] ss:$8 sps:$4 sm:$0xff]  }
  0xa2   : > { %781 = vmatpush1.msra.mxu0 %v690_v5  ;;  %844 = vmatprep.mubr.f32.mxu0 %v2512_v0  ;;  %v2224_v24 = vld [vmem:[%s2822_s27 + $0x80] ss:$8 sps:$4 sm:$0xff]   ;;  %v2225_v25 = vld [vmem:[%s2822_s27 + $0x94] ss:$8 sps:$4 sm:$0xff]   ;;  %v2227_v26 = vld [vmem:[%s2822_s27 + $0x90] ss:$8 sps:$4 sm:$0xff]   ;;  %v853_v5 = vlaneseq }
  0xa3   : > { %1819 = vmatpush1.bf16.msra.mxu1 %v2203_v9  ;;  %v2228_v27 = vld [vmem:[%s2822_s27 + $0xa4] ss:$8 sps:$4 sm:$0xff]   ;;  %v2230_v28 = vld [vmem:[%s2822_s27 + $0xa0] ss:$8 sps:$4 sm:$0xff]   ;;  %v2231_v29 = vld [vmem:[%s2822_s27 + $0xb4] ss:$8 sps:$4 sm:$0xff]   ;;  %1877 = vmatprep.subr.bf16.mxu0 %v2246_v39 }
  0xa4   : > { %1821 = vmatprep.subr.bf16.mxu1 %v2204_v10  ;;  %v2233_v30 = vld [vmem:[%s2822_s27 + $0xb0] ss:$8 sps:$4 sm:$0xff]   ;;  %v2234_v31 = vld [vmem:[%s2822_s27 + $0xc4] ss:$8 sps:$4 sm:$0xff]   ;;  %v2236_v32 = vld [vmem:[%s2822_s27 + $0xc0] ss:$8 sps:$4 sm:$0xff]  }
  0xa5   : > { %v2237_v33 = vld [vmem:[%s2822_s27 + $0xd4] ss:$8 sps:$4 sm:$0xff]   ;;  %v2239_v34 = vld [vmem:[%s2822_s27 + $0xd0] ss:$8 sps:$4 sm:$0xff]   ;;  %v2240_v35 = vld [vmem:[%s2822_s27 + $0xe4] ss:$8 sps:$4 sm:$0xff]  }
  0xa6   : > { %v2242_v36 = vld [vmem:[%s2822_s27 + $0xe0] ss:$8 sps:$4 sm:$0xff]   ;;  %v2243_v37 = vld [vmem:[%s2822_s27 + $0xf4] ss:$8 sps:$4 sm:$0xff]   ;;  %v2245_v38 = vld [vmem:[%s2822_s27 + $0xf0] ss:$8 sps:$4 sm:$0xff]  }
  0xa7   : > { %1823 = vmatpush1.bf16.msra.mxu1 %v2206_v12  ;;  %v2255_v45 = vld [vmem:[%s2800_s24 + $0x34] ss:$8 sps:$4 sm:$0xff]   ;;  %v2257_v46 = vld [vmem:[%s2800_s24 + $0x30] ss:$8 sps:$4 sm:$0xff]   ;;  %v2258_v47 = vld [vmem:[%s2800_s24 + $0x44] ss:$8 sps:$4 sm:$0xff]  }
  0xa8   : > { %1825 = vmatprep.subr.bf16.mxu1 %v2207_v13  ;;  %v2260_v48 = vld [vmem:[%s2800_s24 + $0x40] ss:$8 sps:$4 sm:$0xff]   ;;  %v2261_v49 = vld [vmem:[%s2800_s24 + $0x54] ss:$8 sps:$4 sm:$0xff]   ;;  %v2263_v50 = vld [vmem:[%s2800_s24 + $0x50] ss:$8 sps:$4 sm:$0xff]  }
  0xa9   : > { %1767 = vmatmul.mubr.msk.f32.vlgmr.msra.gmra.mrb[0].mxu0 %vm776_vm2, %v689_v11  ;;  %v2264_v51 = vld [vmem:[%s2800_s24 + $0x64] ss:$8 sps:$4 sm:$0xff]   ;;  %v2266_v52 = vld [vmem:[%s2800_s24 + $0x60] ss:$8 sps:$4 sm:$0xff]   ;;  %v2267_v53 = vld [vmem:[%s2800_s24 + $0x74] ss:$8 sps:$4 sm:$0xff]  }
  0xaa   : > { %1879 = vmatpush1.bf16.msra.mxu0 %v2248_v40  ;;  %v2269_v54 = vld [vmem:[%s2800_s24 + $0x70] ss:$8 sps:$4 sm:$0xff]   ;;  %v2270_v55 = vld [vmem:[%s2800_s24 + $0x84] ss:$8 sps:$4 sm:$0xff]   ;;  %v2272_v56 = vld [vmem:[%s2800_s24 + $0x80] ss:$8 sps:$4 sm:$0xff]  }
  0xab   : > { %1827 = vmatpush1.bf16.msra.mxu1 %v2209_v14  ;;  %1881 = vmatprep.subr.bf16.mxu0 %v2249_v41  ;;  %v2273_v57 = vld [vmem:[%s2800_s24 + $0x94] ss:$8 sps:$4 sm:$0xff]   ;;  %v2275_v58 = vld [vmem:[%s2800_s24 + $0x90] ss:$8 sps:$4 sm:$0xff]   ;;  %v2276_v59 = vld [vmem:[%s2800_s24 + $0xa4] ss:$8 sps:$4 sm:$0xff]  }
  0xac   : > { %1829 = vmatprep.subr.bf16.mxu1 %v2210_v15  ;;  %v2278_v60 = vld [vmem:[%s2800_s24 + $0xa0] ss:$8 sps:$4 sm:$0xff]   ;;  %v2279_v61 = vld [vmem:[%s2800_s24 + $0xb4] ss:$8 sps:$4 sm:$0xff]   ;;  %v2281_v62 = vld [vmem:[%s2800_s24 + $0xb0] ss:$8 sps:$4 sm:$0xff]  }
  0xad   : > { %v2282_v63 = vld [vmem:[%s2800_s24 + $0xc4] ss:$8 sps:$4 sm:$0xff]   ;;  %v2284_v0 = vld [vmem:[%s2800_s24 + $0xc0] ss:$8 sps:$4 sm:$0xff]   ;;  %v2285_v1 = vld [vmem:[%s2800_s24 + $0xd4] ss:$8 sps:$4 sm:$0xff]  }
  0xae   : > { %1883 = vmatpush1.bf16.msra.mxu0 %v2251_v42  ;;  %v2287_v2 = vld [vmem:[%s2800_s24 + $0xd0] ss:$8 sps:$4 sm:$0xff]   ;;  %v2288_v3 = vld [vmem:[%s2800_s24 + $0xe4] ss:$8 sps:$4 sm:$0xff]   ;;  %v2290_v4 = vld [vmem:[%s2800_s24 + $0xe0] ss:$8 sps:$4 sm:$0xff]  }
  0xaf   : > { %1831 = vmatpush1.bf16.msra.mxu1 %v2212_v16  ;;  %1885 = vmatprep.subr.bf16.mxu0 %v2252_v43  ;;  %v854_v6 = vshrl.u32 %v853_v5, 7  ;;  %v851_v8 = vld [vmem:[%s659_s15] sm:$0x3]  ;;  %v2323_v39 = vld [vmem:[%s2802_s2 + $0x90] ss:$8 sps:$4 sm:$0xff]   ;;  %vm1520_vm3 = vcmask 1024  }
  0xb0   : > { %1833 = vmatprep.subr.bf16.mxu1 %v2213_v17  ;;  %v2324_v40 = vld [vmem:[%s2802_s2 + $0xa4] ss:$8 sps:$4 sm:$0xff]   ;;  %v2326_v41 = vld [vmem:[%s2802_s2 + $0xa0] ss:$8 sps:$4 sm:$0xff]   ;;  %v2327_v42 = vld [vmem:[%s2802_s2 + $0xb4] ss:$8 sps:$4 sm:$0xff]  }
  0xb1   : > { %v2896_v7 = vsub.s32 0, %v854_v6  ;;  %v2898_v9 = vsub.s32 1, %v854_v6  ;;  %v2329_v43 = vld [vmem:[%s2802_s2 + $0xb0] ss:$8 sps:$4 sm:$0xff]  }
  0xb2   : > { %1887 = vmatpush1.bf16.msra.mxu0 %v2254_v44  ;;  %v2330_v44 = vld [vmem:[%s2802_s2 + $0xc4] ss:$8 sps:$4 sm:$0xff]  }
  0xb3   : > { %1835 = vmatpush1.bf16.msra.mxu1 %v2215_v18  ;;  %1889 = vmatprep.subr.bf16.mxu0 %v2255_v45  ;;  %v856_v10 = vrot.slane %v851_v8, %v2896_v7  ;;  %v860_v11 = vrot.slane %v851_v8, %v2898_v9  ;;  %v2291_v18 = vld [vmem:[%s2800_s24 + $0xf4] ss:$8 sps:$4 sm:$0xff]   ;;  %v2332_v45 = vld [vmem:[%s2802_s2 + $0xc0] ss:$8 sps:$4 sm:$0xff]  }
  0xb4   : > { %1837 = vmatprep.subr.bf16.mxu1 %v2216_v19  ;;  %v2293_v19 = vld [vmem:[%s2800_s24 + $0xf0] ss:$8 sps:$4 sm:$0xff]  }
  0xb5   : > { %v1412_v6 = vld [vmem:[%s2947_s12 + $0x10] sm:$0xff]  ;;  %v1413_v8 = vld [vmem:[%s2947_s12 + $0x18] sm:$0xff] }
  0xb6   : > { %1891 = vmatpush1.bf16.msra.mxu0 %v2257_v46  ;;  %v2333_v46 = vld [vmem:[%s2802_s2 + $0xd4] ss:$8 sps:$4 sm:$0xff]  }
  0xb7   : > { %1839 = vmatpush1.bf16.msra.mxu1 %v2218_v20  ;;  %1893 = vmatprep.subr.bf16.mxu0 %v2258_v47  ;;  %v2294_v20 = vld [vmem:[%s2802_s2 + $0x4] ss:$8 sps:$4 sm:$0xff]   ;;  %v2335_v47 = vld [vmem:[%s2802_s2 + $0xd0] ss:$8 sps:$4 sm:$0xff]  }
  0xb8   : > { %1841 = vmatprep.subr.bf16.mxu1 %v2219_v21  ;;  %v2296_v21 = vld [vmem:[%s2802_s2] ss:$8 sps:$4 sm:$0xff]  }
  0xba   : > { %1895 = vmatpush1.bf16.msra.mxu0 %v2260_v48  ;;  %v2336_v48 = vld [vmem:[%s2802_s2 + $0xe4] ss:$8 sps:$4 sm:$0xff]  }
  0xbb   : > { %1843 = vmatpush1.bf16.msra.mxu1 %v2221_v22  ;;  %1897 = vmatprep.subr.bf16.mxu0 %v2261_v49  ;;  %v2297_v22 = vld [vmem:[%s2802_s2 + $0x14] ss:$8 sps:$4 sm:$0xff]   ;;  %v2338_v49 = vld [vmem:[%s2802_s2 + $0xe0] ss:$8 sps:$4 sm:$0xff]  }
  0xbc   : > { %1845 = vmatprep.subr.bf16.mxu1 %v2222_v23  ;;  %v2299_v23 = vld [vmem:[%s2802_s2 + $0x10] ss:$8 sps:$4 sm:$0xff]  }
  0xbe   : > { %1899 = vmatpush1.bf16.msra.mxu0 %v2263_v50  ;;  %v963_v50 = vld [vmem:[%s668_s22] sm:$0x3] }
  0xbf   : > { %1847 = vmatpush1.bf16.msra.mxu1 %v2224_v24  ;;  %1901 = vmatprep.subr.bf16.mxu0 %v2264_v51  ;;  %v2300_v24 = vld [vmem:[%s2802_s2 + $0x24] ss:$8 sps:$4 sm:$0xff]   ;;  %v968_v51 = vrot.slane %v963_v50, %v2896_v7 }
  0xc0   : > { %1849 = vmatprep.subr.bf16.mxu1 %v2225_v25  ;;  %v2302_v25 = vld [vmem:[%s2802_s2 + $0x20] ss:$8 sps:$4 sm:$0xff]  }
  0xc2   : > { %1903 = vmatpush1.bf16.msra.mxu0 %v2266_v52  ;;  %v972_v52 = vrot.slane %v963_v50, %v2898_v9  ;;  %v1440_v50 = vld [vmem:[%s2947_s12 + $0xf0] sm:$0xff] }
  0xc3   : > { %1851 = vmatpush1.bf16.msra.mxu1 %v2227_v26  ;;  %1905 = vmatprep.subr.bf16.mxu0 %v2267_v53  ;;  %v2303_v26 = vld [vmem:[%s2802_s2 + $0x34] ss:$8 sps:$4 sm:$0xff]  }
  0xc4   : > { %1853 = vmatprep.subr.bf16.mxu1 %v2228_v27  ;;  %v2305_v27 = vld [vmem:[%s2802_s2 + $0x30] ss:$8 sps:$4 sm:$0xff]  }
  0xc6   : > { %1907 = vmatpush1.bf16.msra.mxu0 %v2269_v54 }
  0xc7   : > { %1855 = vmatpush1.bf16.msra.mxu1 %v2230_v28  ;;  %1909 = vmatprep.subr.bf16.mxu0 %v2270_v55  ;;  %v2306_v28 = vld [vmem:[%s2802_s2 + $0x44] ss:$8 sps:$4 sm:$0xff]  }
  0xc8   : > { %1857 = vmatprep.subr.bf16.mxu1 %v2231_v29  ;;  %v2308_v29 = vld [vmem:[%s2802_s2 + $0x40] ss:$8 sps:$4 sm:$0xff]  }
  0xca   : > { %1911 = vmatpush1.bf16.msra.mxu0 %v2272_v56 }
  0xcb   : > { %1859 = vmatpush1.bf16.msra.mxu1 %v2233_v30  ;;  %1913 = vmatprep.subr.bf16.mxu0 %v2273_v57  ;;  %v2309_v30 = vld [vmem:[%s2802_s2 + $0x54] ss:$8 sps:$4 sm:$0xff]  }
  0xcc   : > { %1861 = vmatprep.subr.bf16.mxu1 %v2234_v31  ;;  %v2311_v31 = vld [vmem:[%s2802_s2 + $0x50] ss:$8 sps:$4 sm:$0xff]  }
  0xce   : > { %1915 = vmatpush1.bf16.msra.mxu0 %v2275_v58 }
  0xcf   : > { %1863 = vmatpush1.bf16.msra.mxu1 %v2236_v32  ;;  %1917 = vmatprep.subr.bf16.mxu0 %v2276_v59  ;;  %v2312_v32 = vld [vmem:[%s2802_s2 + $0x64] ss:$8 sps:$4 sm:$0xff]   ;;  %v2339_v59 = vld [vmem:[%s2802_s2 + $0xf4] ss:$8 sps:$4 sm:$0xff]  }
  0xd0   : > { %1865 = vmatprep.subr.bf16.mxu1 %v2237_v33  ;;  %v2314_v33 = vld [vmem:[%s2802_s2 + $0x60] ss:$8 sps:$4 sm:$0xff]  }
  0xd2   : > { %1919 = vmatpush1.bf16.msra.mxu0 %v2278_v60  ;;  %v2341_v60 = vld [vmem:[%s2802_s2 + $0xf0] ss:$8 sps:$4 sm:$0xff]  }
  0xd3   : > { %1867 = vmatpush1.bf16.msra.mxu1 %v2239_v34  ;;  %1921 = vmatprep.subr.bf16.mxu0 %v2279_v61  ;;  %v2315_v34 = vld [vmem:[%s2802_s2 + $0x74] ss:$8 sps:$4 sm:$0xff]  }
  0xd4   : > { %1869 = vmatprep.subr.bf16.mxu1 %v2240_v35  ;;  %v2317_v35 = vld [vmem:[%s2802_s2 + $0x70] ss:$8 sps:$4 sm:$0xff]   ;;  %v1426_v61 = vld [vmem:[%s2947_s12 + $0x80] sm:$0xff] }
  0xd6   : > { %1923 = vmatpush1.bf16.msra.mxu0 %v2281_v62  ;;  %v1427_v62 = vld [vmem:[%s2947_s12 + $0x88] sm:$0xff] }
  0xd7   : > { %1871 = vmatpush1.bf16.msra.mxu1 %v2242_v36  ;;  %1925 = vmatprep.subr.bf16.mxu0 %v2282_v63  ;;  %v2318_v36 = vld [vmem:[%s2802_s2 + $0x84] ss:$8 sps:$4 sm:$0xff]  }
  0xd8   : > { %1873 = vmatprep.subr.bf16.mxu1 %v2243_v37  ;;  %v2320_v37 = vld [vmem:[%s2802_s2 + $0x80] ss:$8 sps:$4 sm:$0xff]  }
  0xd9   : > { %v1410_v63 = vld [vmem:[%s2947_s12] sm:$0xff] }
  0xda   : > { %1927 = vmatpush1.bf16.msra.mxu0 %v2284_v0  ;;  %v2004_v0 = vpack.c.bf16 %v1427_v62, %v1426_v61 }
  0xdb   : > { %1875 = vmatpush1.bf16.msra.mxu1 %v2245_v38  ;;  %1929 = vmatprep.subr.bf16.mxu0 %v2285_v1  ;;  %v2321_v38 = vld [vmem:[%s2802_s2 + $0x94] ss:$8 sps:$4 sm:$0xff]   ;;  %v1411_v1 = vld [vmem:[%s2947_s12 + $0x8] sm:$0xff] }
  0xdc   : > { %1941 = vmatprep.subr.bf16.mxu1 %v2294_v20  ;;  %v1416_v20 = vld [vmem:[%s2947_s12 + $0x30] sm:$0xff] }
  0xde   : > { %1931 = vmatpush1.bf16.msra.mxu0 %v2287_v2  ;;  %v1428_v2 = vld [vmem:[%s2947_s12 + $0x90] sm:$0xff] }
  0xdf   : > { %1933 = vmatprep.subr.bf16.mxu0 %v2288_v3  ;;  %v1429_v3 = vld [vmem:[%s2947_s12 + $0x98] sm:$0xff] }
  0xe0   : > { %v2008_v5 = vpack.c.bf16 %v1429_v3, %v1428_v2  ;;  %v1768_v2 = vld [vmem:[%s684_s30] ss:$0 sm:$0xff] }
  0xe2   : > { %1935 = vmatpush1.bf16.msra.mxu0 %v2290_v4  ;;  %v2006_v4 = vpack.c.bf16 %v1411_v1, %v1410_v63 }
  0xe3   : > { %1937 = vmatprep.subr.bf16.mxu0 %v2291_v18 }
  0xe6   : > { %1939 = vmatpush1.bf16.msra.mxu0 %v2293_v19 }
  0xe7   : > { %2005 = vmatprep.subr.bf16.mxu0 %v2004_v0 }
 0x17c   : > { %v846_v12 = vpop.f32.mrb[0].mxu0 }
 0x17d   : > { %v863_v13 = vadd.f32 %v856_v10, %v846_v12  ;;  %v848_v14 = vpop.f32.mrb[1].mxu0  ;;  %v1430_v10 = vld [vmem:[%s2947_s12 + $0xa0] sm:$0xff]  ;;  %v2010_v12 = vpack.c.bf16 %v1413_v8, %v1412_v6 }
 0x17e   : > { %v864_v15 = vadd.f32 %v860_v11, %v848_v14  ;;  %v1431_v11 = vld [vmem:[%s2947_s12 + $0xa8] sm:$0xff]  ;;  %v1414_v14 = vld [vmem:[%s2947_s12 + $0x20] sm:$0xff] }
 0x17f   : > { %v865_v17 = vmax.f32 %v863_v13, 0.0  ;;  %v2012_v13 = vpack.c.bf16 %v1431_v11, %v1430_v10 }
 0x180   : > { %v866_v16 = vmax.f32 %v864_v15, 0.0  ;;  %v1415_v15 = vld [vmem:[%s2947_s12 + $0x28] sm:$0xff] }
 0x181   : > { %v2014_v18 = vpack.c.bf16 %v1415_v15, %v1414_v14 }
 0x182   : > { %1039 = vmatprep.mubr.f32.mxu1 %v866_v16  ;;  %v1432_v16 = vld [vmem:[%s2947_s12 + $0xb0] sm:$0xff] }
 0x183   : > { %1040 = vmatmul.mubr.f32.vlgmr.msra.gmra.mrb[0].mxu1 %v865_v17  ;;  %v1433_v17 = vld [vmem:[%s2947_s12 + $0xb8] sm:$0xff] }
 0x184   : > { %1943 = vmatpush1.bf16.msra.mxu1 %v2296_v21  ;;  %v2016_v19 = vpack.c.bf16 %v1433_v17, %v1432_v16  ;;  %v1417_v21 = vld [vmem:[%s2947_s12 + $0x38] sm:$0xff] }
 0x185   : > { %1945 = vmatprep.subr.bf16.mxu1 %v2297_v22  ;;  %v1434_v22 = vld [vmem:[%s2947_s12 + $0xc0] sm:$0xff] }
 0x188   : > { %1947 = vmatpush1.bf16.msra.mxu1 %v2299_v23  ;;  %v1435_v23 = vld [vmem:[%s2947_s12 + $0xc8] sm:$0xff] }
 0x189   : > { %1949 = vmatprep.subr.bf16.mxu1 %v2300_v24  ;;  %v2018_v24 = vpack.c.bf16 %v1417_v21, %v1416_v20 }
 0x18c   : > { %1951 = vmatpush1.bf16.msra.mxu1 %v2302_v25  ;;  %v2020_v25 = vpack.c.bf16 %v1435_v23, %v1434_v22 }
 0x18d   : > { %1953 = vmatprep.subr.bf16.mxu1 %v2303_v26  ;;  %v1418_v26 = vld [vmem:[%s2947_s12 + $0x40] sm:$0xff] }
 0x190   : > { %1955 = vmatpush1.bf16.msra.mxu1 %v2305_v27  ;;  %v1419_v27 = vld [vmem:[%s2947_s12 + $0x48] sm:$0xff] }
 0x191   : > { %1957 = vmatprep.subr.bf16.mxu1 %v2306_v28  ;;  %v1436_v28 = vld [vmem:[%s2947_s12 + $0xd0] sm:$0xff] }
 0x194   : > { %1959 = vmatpush1.bf16.msra.mxu1 %v2308_v29  ;;  %v1437_v29 = vld [vmem:[%s2947_s12 + $0xd8] sm:$0xff] }
 0x195   : > { %1961 = vmatprep.subr.bf16.mxu1 %v2309_v30  ;;  %v2022_v30 = vpack.c.bf16 %v1419_v27, %v1418_v26 }
 0x198   : > { %1963 = vmatpush1.bf16.msra.mxu1 %v2311_v31  ;;  %v2024_v31 = vpack.c.bf16 %v1437_v29, %v1436_v28 }
 0x199   : > { %1965 = vmatprep.subr.bf16.mxu1 %v2312_v32  ;;  %v1420_v32 = vld [vmem:[%s2947_s12 + $0x50] sm:$0xff] }
 0x19c   : > { %1967 = vmatpush1.bf16.msra.mxu1 %v2314_v33  ;;  %v1421_v33 = vld [vmem:[%s2947_s12 + $0x58] sm:$0xff] }
 0x19d   : > { %1969 = vmatprep.subr.bf16.mxu1 %v2315_v34  ;;  %v1438_v34 = vld [vmem:[%s2947_s12 + $0xe0] sm:$0xff] }
 0x1a0   : > { %1971 = vmatpush1.bf16.msra.mxu1 %v2317_v35  ;;  %v1439_v35 = vld [vmem:[%s2947_s12 + $0xe8] sm:$0xff] }
 0x1a1   : > { %1973 = vmatprep.subr.bf16.mxu1 %v2318_v36  ;;  %v2026_v36 = vpack.c.bf16 %v1421_v33, %v1420_v32 }
 0x1a4   : > { %1975 = vmatpush1.bf16.msra.mxu1 %v2320_v37  ;;  %v2028_v37 = vpack.c.bf16 %v1439_v35, %v1438_v34 }
 0x1a5   : > { %1977 = vmatprep.subr.bf16.mxu1 %v2321_v38  ;;  %v1144_v38 = vld [vmem:[%s672_s18] sm:$0x3] }
 0x1a8   : > { %1979 = vmatpush1.bf16.msra.mxu1 %v2323_v39  ;;  %v1149_v39 = vrot.slane %v1144_v38, %v2896_v7 }
 0x1a9   : > { %1981 = vmatprep.subr.bf16.mxu1 %v2324_v40  ;;  %v1153_v40 = vrot.slane %v1144_v38, %v2898_v9 }
 0x1ac   : > { %1983 = vmatpush1.bf16.msra.mxu1 %v2326_v41 }
 0x1ad   : > { %1985 = vmatprep.subr.bf16.mxu1 %v2327_v42 }
 0x1b0   : > { %1987 = vmatpush1.bf16.msra.mxu1 %v2329_v43 }
 0x1b1   : > { %1989 = vmatprep.subr.bf16.mxu1 %v2330_v44 }
 0x1b4   : > { %1991 = vmatpush1.bf16.msra.mxu1 %v2332_v45 }
 0x1b5   : > { %1993 = vmatprep.subr.bf16.mxu1 %v2333_v46 }
 0x1b8   : > { %1995 = vmatpush1.bf16.msra.mxu1 %v2335_v47  ;;  %v1422_v47 = vld [vmem:[%s2947_s12 + $0x60] sm:$0xff] }
 0x1b9   : > { %1997 = vmatprep.subr.bf16.mxu1 %v2336_v48  ;;  %v1423_v48 = vld [vmem:[%s2947_s12 + $0x68] sm:$0xff] }
 0x1bc   : > { %1999 = vmatpush1.bf16.msra.mxu1 %v2338_v49  ;;  %v2030_v49 = vpack.c.bf16 %v1423_v48, %v1422_v47 }
 0x1bd   : > { %2001 = vmatprep.subr.bf16.mxu1 %v2339_v59 }
 0x1c0   : > { %2003 = vmatpush1.bf16.msra.mxu1 %v2341_v60 }
 0x256   : > { %v1041_v53 = vpop.f32.mrb[0].mxu1 }
 0x257   : > { %v1042_v54 = vadd.f32 %v1041_v53, %v968_v51  ;;  %v1043_v55 = vpop.f32.mrb[1].mxu1  ;;  %v1441_v51 = vld [vmem:[%s2947_s12 + $0xf8] sm:$0xff]  ;;  %v1424_v53 = vld [vmem:[%s2947_s12 + $0x70] sm:$0xff] }
 0x258   : > { %v1044_v56 = vadd.f32 %v1043_v55, %v972_v52  ;;  %v2032_v52 = vpack.c.bf16 %v1441_v51, %v1440_v50 }
 0x259   : > { %v1046_v58 = vmax.f32 %v1042_v54, 0.0  ;;  %v1425_v54 = vld [vmem:[%s2947_s12 + $0x78] sm:$0xff] }
 0x25a   : > { %v1047_v57 = vmax.f32 %v1044_v56, 0.0  ;;  %v2034_v55 = vpack.c.bf16 %v1425_v54, %v1424_v53  ;;  %v1325_v56 = vld [vmem:[%s676_s16] sm:$0x3] }
 0x25c   : > { %1220 = vmatprep.mubr.f32.mxu0 %v1047_v57  ;;  %v1330_v57 = vrot.slane %v1325_v56, %v2896_v7 }
 0x25d   : > { %1221 = vmatmul.mubr.f32.vlgmr.msra.gmra.mrb[2].mxu0 %v1046_v58  ;;  %v1334_v58 = vrot.slane %v1325_v56, %v2898_v9 }
 0x25e   : > { %2007 = vmatpush3.bf16.msra.mxu0 %v2006_v4 }
 0x25f   : > { %2009 = vmatprep.subr.bf16.mxu0 %v2008_v5 }
 0x262   : > { %2011 = vmatpush3.bf16.msra.mxu0 %v2010_v12 }
 0x263   : > { %2013 = vmatprep.subr.bf16.mxu0 %v2012_v13 }
 0x266   : > { %2015 = vmatpush3.bf16.msra.mxu0 %v2014_v18 }
 0x267   : > { %2017 = vmatprep.subr.bf16.mxu0 %v2016_v19 }
 0x26a   : > { %2019 = vmatpush3.bf16.msra.mxu0 %v2018_v24 }
 0x26b   : > { %2021 = vmatprep.subr.bf16.mxu0 %v2020_v25 }
 0x26e   : > { %2023 = vmatpush3.bf16.msra.mxu0 %v2022_v30 }
 0x26f   : > { %2025 = vmatprep.subr.bf16.mxu0 %v2024_v31 }
 0x272   : > { %2027 = vmatpush3.bf16.msra.mxu0 %v2026_v36 }
 0x273   : > { %2029 = vmatprep.subr.bf16.mxu0 %v2028_v37 }
 0x276   : > { %2031 = vmatpush3.bf16.msra.mxu0 %v2030_v49 }
 0x277   : > { %2033 = vmatprep.subr.bf16.mxu0 %v2032_v52 }
 0x27a   : > { %2035 = vmatpush3.bf16.msra.mxu0 %v2034_v55 }
 0x330   : > { %v1222_v41 = vpop.f32.mrb[2].mxu0 }
 0x331   : > { %v1223_v42 = vadd.f32 %v1222_v41, %v1149_v39  ;;  %v1224_v43 = vpop.f32.mrb[3].mxu0 }
 0x332   : > { %v1225_v44 = vadd.f32 %v1224_v43, %v1153_v40 }
 0x333   : > { %v1227_v46 = vmax.f32 %v1223_v42, 0.0 }
 0x334   : > { %v1228_v45 = vmax.f32 %v1225_v44, 0.0 }
 0x336   : > { %1401 = vmatprep.mubr.f32.mxu1 %v1228_v45 }
 0x337   : > { %1402 = vmatmul.mubr.f32.vlgmr.msra.gmra.mrb[2].mxu1 %v1227_v46 }
 0x40a   : > { %v1403_v59 = vpop.f32.mrb[2].mxu1 }
 0x40b   : > { %v1404_v60 = vadd.f32 %v1403_v59, %v1330_v57  ;;  %v1405_v61 = vpop.f32.mrb[3].mxu1 }
 0x40c   : > { %v1406_v62 = vadd.f32 %v1405_v61, %v1334_v58 }
 0x40d   : > { %v1408_v0 = vmax.f32 %v1404_v60, 0.0 }
 0x40e   : > { %v1409_v63 = vmax.f32 %v1406_v62, 0.0 }
 0x410   : > { %1513 = vmatprep.mubr.f32.mxu0 %v1409_v63 }
 0x411   : > { %1514 = vmatmul.mubr.f32.vlgmr.msra.gmra.mrb[4].mxu0 %v1408_v0 }
 0x4e4   : > { %v1809_v1 = vpop.f32.mrb[4].mxu0 }
 0x4e5   : > { %v1810_v3 = vpop.f32.mrb[5].mxu0 }
 0x4e6   : > { %v1811_v4 = vadd.f32 %v1810_v3, %v1809_v1 }
 0x4e8   : > { %v1516_v7 = vadd.f32 %v1811_v4, %v1768_v2 }
 0x4ea   : > { %2342 = vtanh.f32 %v1516_v7 }
 0x4f4   : > { %v2343_v9 = vpop.eup %2342 }
 0x4f5   : > { %1521 = vst.msk [vmem:[%s688_s17] sm:$0x3] %vm1520_vm3, %v2343_v9 }
 0x4f6 PF: > { %s3067_s28 = sld [smem:[#allocation13_spill]]  ;;  %s3068_s22 = sld [smem:[#allocation12_spill]] }
 0x4f7   : > { %s3069_s27 = sld [smem:[#allocation14_spill]]  ;;  %s3070_s25 = smov %s2496_s26 }
 0x4fc   : > { %p27_p3 = scmp.ge.s32.totalorder %s3067_s28, 4   ;;  %s3071_s26 = smov %s3068_s22 }
 0x4fe   :  { %29 = sbr.rel (!%p27_p3) target bundleno = 12 (0xc), region = 165 }
 0x505   :  { %1541 = vsyncpa [#allocation3], 1 }
 0x506   :  { %1543 = vsyncpa [#allocation3 + $0x1], 1 }
 0x507   :  { %1544 = vsyncpa [#allocation5], 1 }
 0x508   :  { %1546 = vsyncpa [#allocation5 + $0x1], 1 }
 0x509   :  { %1547 = vsyncpa [#allocation8], 1 }
 0x50a   :  { %1549 = vsyncpa [#allocation8 + $0x1], 1 }

</bundles_post_ra>
